<compile_context>
chip_gen: v6e
topology: v6e:2x2x1
jax: 0.10.0
libtpu: 0.0.40
codegen_flags: <defaults>
</compile_context>

<pallas_src>
import jax
import jax.numpy as jnp
from jax.experimental import pallas as pl
from jax.experimental.pallas import tpu as pltpu


def _round_up(a, m):
    return ((a + m - 1) // m) * m


def _make_highway_kernel(n_layers, matmul_dtype):
    def kernel(x_ref, w_ref, b_ref, o_ref):
        # x_ref : (TILE_N, Dp)         f32
        # w_ref : (L, 2, Dp, Dp)       f32   [l,0]=W_h^T, [l,1]=W_g^T
        # b_ref : (L, 2, 1, Dp)        f32
        # o_ref : (TILE_N, Dp)         f32
        x = x_ref[...].astype(jnp.float32)
        # Small static layer count -> unrolled Python loop.
        for l in range(n_layers):
            w_h = w_ref[l, 0]
            w_g = w_ref[l, 1]
            if matmul_dtype is not None:
                xm = x.astype(matmul_dtype)
                w_h = w_h.astype(matmul_dtype)
                w_g = w_g.astype(matmul_dtype)
            else:
                xm = x
            h = jnp.dot(xm, w_h, preferred_element_type=jnp.float32) + b_ref[l, 0]
            g = jnp.dot(xm, w_g, preferred_element_type=jnp.float32) + b_ref[l, 1]
            h = jnp.maximum(h, 0.0)            # relu branch (VPU, f32)
            g = jax.nn.sigmoid(g)              # gate (EUP), f32
            x = g * x + (1.0 - g) * h
        o_ref[...] = x.astype(o_ref.dtype)

    return kernel


def highway_forward(x, weights, biases, *, tile_n=512, matmul_dtype=None):
    """x: (..., D); weights: (L, 2, D, D); biases: (L, 2, 1, D)."""
    orig_shape = x.shape
    orig_dtype = x.dtype
    d = orig_shape[-1]
    L = weights.shape[0]

    x2 = x.reshape(-1, d).astype(jnp.float32)
    n = x2.shape[0]

    # Lane-dense feature dim (multiple of 128); sublane-aligned row tile.
    dp = _round_up(d, 128)
    tile_n = min(tile_n, _round_up(n, 8))
    n_pad = _round_up(n, tile_n)

    w = weights.astype(jnp.float32)
    b = biases.astype(jnp.float32)
    if dp != d:
        # Padded lanes stay exactly zero through every layer:
        # h = relu(0) = 0, new_x = g*0 + (1-g)*0 = 0.
        x2 = jnp.pad(x2, ((0, 0), (0, dp - d)))
        w = jnp.pad(w, ((0, 0), (0, 0), (0, dp - d), (0, dp - d)))
        b = jnp.pad(b, ((0, 0), (0, 0), (0, 0), (0, dp - d)))
    if n_pad != n:
        x2 = jnp.pad(x2, ((0, n_pad - n), (0, 0)))

    grid = (n_pad // tile_n,)

    # VMEM budget: double-buffered x/out row tiles + (conservatively 2x)
    # resident weights/biases + headroom, clamped to fit v7x's 64 MiB VMEM.
    vmem_bytes = 4 * (2 * 2 * tile_n * dp          # x + out, 2 buffers each
                      + 2 * L * 2 * dp * dp        # weights
                      + 2 * L * 2 * dp)            # biases
    vmem_bytes = int(vmem_bytes * 1.25) + (4 << 20)
    vmem_bytes = min(max(vmem_bytes, 32 << 20), 56 << 20)

    cost = pl.CostEstimate(
        flops=4 * n_pad * dp * dp * L,             # two DxD matmuls per layer
        transcendentals=n_pad * dp * L,            # sigmoid
        bytes_accessed=4 * (2 * n_pad * dp + 2 * L * dp * dp + 2 * L * dp),
    )

    kernel = _make_highway_kernel(L, matmul_dtype)

    out = pl.pallas_call(
        kernel,
        out_shape=jax.ShapeDtypeStruct((n_pad, dp), jnp.float32),
        grid_spec=pltpu.PrefetchScalarGridSpec(
            num_scalar_prefetch=0,
            grid=grid,
            in_specs=[
                # Row tiles stream through VMEM (software pipelined).
                pl.BlockSpec((tile_n, dp), lambda i: (i, 0)),
                # Weights / biases: constant index_map -> VMEM-resident across
                # the whole row grid (fetched once, no per-step refetch).
                pl.BlockSpec((L, 2, dp, dp), lambda i: (0, 0, 0, 0)),
                pl.BlockSpec((L, 2, 1, dp), lambda i: (0, 0, 0, 0)),
            ],
            out_specs=pl.BlockSpec((tile_n, dp), lambda i: (i, 0)),
        ),
        compiler_params=pltpu.CompilerParams(
            dimension_semantics=("parallel",),     # rows independent -> megacore
            vmem_limit_bytes=vmem_bytes,
        ),
        cost_estimate=cost,
    )(x2, w, b)

    out = out[:n, :d].reshape(orig_shape)
    return out.astype(orig_dtype)


def init_highway_params(key, input_dim, layers):
    """Matches Highway.reset_parameters:
       weight ~ N(0, 0.02); bias[:D] = 0 (relu branch), bias[D:] = 1 (gate).
       Returned layout: weights (L, 2, D, D) with [l,0]=W_h^T, [l,1]=W_g^T
       (so the kernel matmul is x @ W), biases (L, 2, 1, D)."""
    w_pt = jax.random.normal(key, (layers, 2 * input_dim, input_dim),
                             dtype=jnp.float32) * 0.02        # PyTorch (2D, D)
    w_t = jnp.transpose(w_pt, (0, 2, 1))                      # (L, D, 2D) = W^T
    w = jnp.stack([w_t[:, :, :input_dim],                     # W_h^T
                   w_t[:, :, input_dim:]], axis=1)            # W_g^T -> (L,2,D,D)
    b = jnp.stack([jnp.zeros((layers, 1, input_dim), jnp.float32),
                   jnp.ones((layers, 1, input_dim), jnp.float32)],
                  axis=1)                                      # (L, 2, 1, D)
    return w, b


def _reference_forward(x, weights, biases):
    """Plain-JAX reference (same math as the PyTorch module)."""
    for l in range(weights.shape[0]):
        h = jax.nn.relu(x @ weights[l, 0] + biases[l, 0, 0])
        g = jax.nn.sigmoid(x @ weights[l, 1] + biases[l, 1, 0])
        x = g * x + (1.0 - g) * h
    return x


if __name__ == "__main__":
    key = jax.random.PRNGKey(0)
    k_x, k_w = jax.random.split(key)

    input_dim = 32
    n_layers = 2
    batch, seq = 2, 8

    x = jax.random.normal(k_x, (batch, seq, input_dim), dtype=jnp.float32)
    weights, biases = init_highway_params(k_w, input_dim, n_layers)

    out = highway_forward(x, weights, biases)
    out = jax.block_until_ready(out)

    ref = _reference_forward(x, weights, biases)
    assert out.shape == x.shape
    assert jnp.allclose(out, ref, atol=1e-5, rtol=1e-5)

    print("KERNEL_OK")
</pallas_src>

<mosaic_0001>
module attributes {stable_mosaic.version = 11 : i64} {
  func.func @kernel(%arg0: i32, %arg1: memref<16x128xf32, #tpu.memory_space<vmem>>, %arg2: memref<2x2x128x128xf32, #tpu.memory_space<vmem>>, %arg3: memref<2x2x1x128xf32, #tpu.memory_space<vmem>>, %arg4: memref<16x128xf32, #tpu.memory_space<vmem>>) attributes {dimension_semantics = [#tpu.dimension_semantics<parallel>], iteration_bounds = array<i64: 1>, scalar_prefetch = 0 : i64, scratch_operands = 0 : i64, tpu.core_type = #tpu.core_type<tc>, window_params = [{transform_indices = @transform_0, window_bounds = array<i64: 16, 128>}, {pipeline_mode = #tpu.pipeline_mode<synchronous>, transform_indices = @transform_1, window_bounds = array<i64: 2, 2, 128, 128>}, {pipeline_mode = #tpu.pipeline_mode<synchronous>, transform_indices = @transform_2, window_bounds = array<i64: 2, 2, 1, 128>}, {transform_indices = @transform_3, window_bounds = array<i64: 16, 128>}]} {
    %c0 = arith.constant 0 : index
    %c0_0 = arith.constant 0 : index
    %0 = vector.load %arg1[%c0, %c0_0] : memref<16x128xf32, #tpu.memory_space<vmem>>, vector<16x128xf32>
    %c0_1 = arith.constant 0 : index
    %c0_2 = arith.constant 0 : index
    %c0_3 = arith.constant 0 : index
    %c0_4 = arith.constant 0 : index
    %1 = vector.load %arg2[%c0_1, %c0_2, %c0_3, %c0_4] : memref<2x2x128x128xf32, #tpu.memory_space<vmem>>, vector<1x1x128x128xf32>
    %2 = vector.shape_cast %1 : vector<1x1x128x128xf32> to vector<128x128xf32>
    %c0_5 = arith.constant 0 : index
    %c1 = arith.constant 1 : index
    %c0_6 = arith.constant 0 : index
    %c0_7 = arith.constant 0 : index
    %3 = vector.load %arg2[%c0_5, %c1, %c0_6, %c0_7] : memref<2x2x128x128xf32, #tpu.memory_space<vmem>>, vector<1x1x128x128xf32>
    %4 = vector.shape_cast %3 : vector<1x1x128x128xf32> to vector<128x128xf32>
    %cst = arith.constant dense<0.000000e+00> : vector<16x128xf32>
    %5 = tpu.matmul %0, %2, %cst {dimension_numbers = #tpu.dot_dimension_numbers<[1], [0], [0], [1], [0, 0, 1, 1], [], []>} : vector<16x128xf32>, vector<128x128xf32>, vector<16x128xf32> -> vector<16x128xf32>
    %c0_8 = arith.constant 0 : index
    %c0_9 = arith.constant 0 : index
    %c0_10 = arith.constant 0 : index
    %c0_11 = arith.constant 0 : index
    %6 = vector.load %arg3[%c0_8, %c0_9, %c0_10, %c0_11] : memref<2x2x1x128xf32, #tpu.memory_space<vmem>>, vector<1x1x1x128xf32>
    %7 = vector.shape_cast %6 : vector<1x1x1x128xf32> to vector<1x128xf32>
    %8 = vector.broadcast %7 : vector<1x128xf32> to vector<16x128xf32>
    %9 = arith.addf %5, %8 : vector<16x128xf32>
    %cst_12 = arith.constant dense<0.000000e+00> : vector<16x128xf32>
    %10 = tpu.matmul %0, %4, %cst_12 {dimension_numbers = #tpu.dot_dimension_numbers<[1], [0], [0], [1], [0, 0, 1, 1], [], []>} : vector<16x128xf32>, vector<128x128xf32>, vector<16x128xf32> -> vector<16x128xf32>
    %c0_13 = arith.constant 0 : index
    %c1_14 = arith.constant 1 : index
    %c0_15 = arith.constant 0 : index
    %c0_16 = arith.constant 0 : index
    %11 = vector.load %arg3[%c0_13, %c1_14, %c0_15, %c0_16] : memref<2x2x1x128xf32, #tpu.memory_space<vmem>>, vector<1x1x1x128xf32>
    %12 = vector.shape_cast %11 : vector<1x1x1x128xf32> to vector<1x128xf32>
    %13 = vector.broadcast %12 : vector<1x128xf32> to vector<16x128xf32>
    %14 = arith.addf %10, %13 : vector<16x128xf32>
    %cst_17 = arith.constant 0.000000e+00 : f32
    %15 = vector.broadcast %cst_17 : f32 to vector<16x128xf32>
    %16 = arith.maximumf %9, %15 : vector<16x128xf32>
    %17 = arith.negf %14 : vector<16x128xf32>
    %18 = math.exp %17 : vector<16x128xf32>
    %cst_18 = arith.constant 1.000000e+00 : f32
    %19 = vector.broadcast %cst_18 : f32 to vector<16x128xf32>
    %20 = arith.addf %19, %18 : vector<16x128xf32>
    %21 = arith.divf %19, %20 : vector<16x128xf32>
    %22 = arith.mulf %21, %0 : vector<16x128xf32>
    %cst_19 = arith.constant 1.000000e+00 : f32
    %23 = vector.broadcast %cst_19 : f32 to vector<16x128xf32>
    %24 = arith.subf %23, %21 : vector<16x128xf32>
    %25 = arith.mulf %24, %16 : vector<16x128xf32>
    %26 = arith.addf %22, %25 : vector<16x128xf32>
    %c1_20 = arith.constant 1 : index
    %c0_21 = arith.constant 0 : index
    %c0_22 = arith.constant 0 : index
    %c0_23 = arith.constant 0 : index
    %27 = vector.load %arg2[%c1_20, %c0_21, %c0_22, %c0_23] : memref<2x2x128x128xf32, #tpu.memory_space<vmem>>, vector<1x1x128x128xf32>
    %28 = vector.shape_cast %27 : vector<1x1x128x128xf32> to vector<128x128xf32>
    %c1_24 = arith.constant 1 : index
    %c1_25 = arith.constant 1 : index
    %c0_26 = arith.constant 0 : index
    %c0_27 = arith.constant 0 : index
    %29 = vector.load %arg2[%c1_24, %c1_25, %c0_26, %c0_27] : memref<2x2x128x128xf32, #tpu.memory_space<vmem>>, vector<1x1x128x128xf32>
    %30 = vector.shape_cast %29 : vector<1x1x128x128xf32> to vector<128x128xf32>
    %cst_28 = arith.constant dense<0.000000e+00> : vector<16x128xf32>
    %31 = tpu.matmul %26, %28, %cst_28 {dimension_numbers = #tpu.dot_dimension_numbers<[1], [0], [0], [1], [0, 0, 1, 1], [], []>} : vector<16x128xf32>, vector<128x128xf32>, vector<16x128xf32> -> vector<16x128xf32>
    %c1_29 = arith.constant 1 : index
    %c0_30 = arith.constant 0 : index
    %c0_31 = arith.constant 0 : index
    %c0_32 = arith.constant 0 : index
    %32 = vector.load %arg3[%c1_29, %c0_30, %c0_31, %c0_32] : memref<2x2x1x128xf32, #tpu.memory_space<vmem>>, vector<1x1x1x128xf32>
    %33 = vector.shape_cast %32 : vector<1x1x1x128xf32> to vector<1x128xf32>
    %34 = vector.broadcast %33 : vector<1x128xf32> to vector<16x128xf32>
    %35 = arith.addf %31, %34 : vector<16x128xf32>
    %cst_33 = arith.constant dense<0.000000e+00> : vector<16x128xf32>
    %36 = tpu.matmul %26, %30, %cst_33 {dimension_numbers = #tpu.dot_dimension_numbers<[1], [0], [0], [1], [0, 0, 1, 1], [], []>} : vector<16x128xf32>, vector<128x128xf32>, vector<16x128xf32> -> vector<16x128xf32>
    %c1_34 = arith.constant 1 : index
    %c1_35 = arith.constant 1 : index
    %c0_36 = arith.constant 0 : index
    %c0_37 = arith.constant 0 : index
    %37 = vector.load %arg3[%c1_34, %c1_35, %c0_36, %c0_37] : memref<2x2x1x128xf32, #tpu.memory_space<vmem>>, vector<1x1x1x128xf32>
    %38 = vector.shape_cast %37 : vector<1x1x1x128xf32> to vector<1x128xf32>
    %39 = vector.broadcast %38 : vector<1x128xf32> to vector<16x128xf32>
    %40 = arith.addf %36, %39 : vector<16x128xf32>
    %cst_38 = arith.constant 0.000000e+00 : f32
    %41 = vector.broadcast %cst_38 : f32 to vector<16x128xf32>
    %42 = arith.maximumf %35, %41 : vector<16x128xf32>
    %43 = arith.negf %40 : vector<16x128xf32>
    %44 = math.exp %43 : vector<16x128xf32>
    %cst_39 = arith.constant 1.000000e+00 : f32
    %45 = vector.broadcast %cst_39 : f32 to vector<16x128xf32>
    %46 = arith.addf %45, %44 : vector<16x128xf32>
    %47 = arith.divf %45, %46 : vector<16x128xf32>
    %48 = arith.mulf %47, %26 : vector<16x128xf32>
    %cst_40 = arith.constant 1.000000e+00 : f32
    %49 = vector.broadcast %cst_40 : f32 to vector<16x128xf32>
    %50 = arith.subf %49, %47 : vector<16x128xf32>
    %51 = arith.mulf %50, %42 : vector<16x128xf32>
    %52 = arith.addf %48, %51 : vector<16x128xf32>
    %c0_41 = arith.constant 0 : index
    %c0_42 = arith.constant 0 : index
    %53 = vector.load %arg4[%c0_41, %c0_42] : memref<16x128xf32, #tpu.memory_space<vmem>>, vector<16x128xf32>
    tpu.vector_store %arg4[%c0_41, %c0_42], %52 {strides = array<i32>} : memref<16x128xf32, #tpu.memory_space<vmem>>, vector<16x128xf32>,
    return
  }
  func.func @transform_0(%arg0: i32) -> (i32, i32) {
    %c0_i32 = arith.constant 0 : i32
    %c0_i32_0 = arith.constant 0 : i32
    return %arg0, %c0_i32 : i32, i32
  }
  func.func @transform_1(%arg0: i32) -> (i32, i32, i32, i32) {
    %c0_i32 = arith.constant 0 : i32
    %c0_i32_0 = arith.constant 0 : i32
    %c0_i32_1 = arith.constant 0 : i32
    %c0_i32_2 = arith.constant 0 : i32
    %c0_i32_3 = arith.constant 0 : i32
    return %c0_i32, %c0_i32_0, %c0_i32_1, %c0_i32_2 : i32, i32, i32, i32
  }
  func.func @transform_2(%arg0: i32) -> (i32, i32, i32, i32) {
    %c0_i32 = arith.constant 0 : i32
    %c0_i32_0 = arith.constant 0 : i32
    %c0_i32_1 = arith.constant 0 : i32
    %c0_i32_2 = arith.constant 0 : i32
    %c0_i32_3 = arith.constant 0 : i32
    return %c0_i32, %c0_i32_0, %c0_i32_1, %c0_i32_2 : i32, i32, i32, i32
  }
  func.func @transform_3(%arg0: i32) -> (i32, i32) {
    %c0_i32 = arith.constant 0 : i32
    %c0_i32_0 = arith.constant 0 : i32
    return %arg0, %c0_i32 : i32, i32
  }
}

</mosaic_0001>

<bundles_post_ra>
// kernel: tpu_custom_call.1
= control target key start
LH: loop header
LB: loop body
LE: loop exit
PB: predicated region body
PF: predicated region fallthrough
CT: control target
= control target key end

     0   :  { %8 = vsyncpa [#allocation3], 0  ;;  %s909_s0 = inlined_call_operand.hbm [shape: f32[16,128], index: 0, kind: input, shape index: {}]   ;;  %s910_s1 = inlined_call_operand.hbm [shape: f32[2,2,128,128], index: 1, kind: input, shape index: {}]   ;;  %s911_s2 = inlined_call_operand.hbm [shape: f32[2,2,1,128], index: 2, kind: input, shape index: {}]   ;;  %s912_s3 = inlined_call_operand.hbm [shape: f32[16,128], index: 3, kind: output, shape index: {}]  }
   0x1   :  { %9 = vsyncpa [#allocation6], 0 }
   0x2   :  { %10 = vsyncpa [#allocation4], 0  ;;  %s850_s12 = smov [#allocation5]   ;;  %s851_s14 = smov [#allocation2]  }
   0x3   :  { %s28_s13 = sshll.u32 %s850_s12, 4  ;;  %s16_s15 = sshll.u32 %s851_s14, 4  ;;  %s29_s13 = int_to_ptr.vmem [resolvable:$true] %s28_s13  ;;  %s17_s15 = int_to_ptr.vmem [resolvable:$true] %s16_s15 }
   0x4   :  { %s772_s16 = scalar_lea.vmem %s29_s13, 8192  ;;  %p777_p1 = scmp.lt.s32.totalorder %s29_s13, %s29_s13 }
   0x5   :  { %p773_p0 = scmp.ne.s32.totalorder %s29_s13, %s772_s16  ;;  %p778_p2 = scmp.lt.s32.totalorder %s772_s16, %s772_s16 }
   0x7   :  { %p779_p3 = por %p778_p2, %p777_p1 }
   0x9   :  { %p780_p4 = pnand %p779_p3, %p773_p0 }
   0xb   :  { %783 = shalt.err (!%p780_p4)
}
   0xc   :  { %s852_s17 = smov 128   ;;  %s853_s18 = smov 8  }
   0xd   :  { %34 = dma.hbm_to_vmem [thread:$0]  %s910_s1, 8192, %s29_s13, [#allocation6], %s852_s17, %s852_s17, %s853_s18  }
   0xe   :  { %s792_s21 = scalar_lea.vmem %s17_s15, 256  ;;  %p797_p6 = scmp.lt.s32.totalorder %s17_s15, %s17_s15 }
   0xf   :  { %p793_p5 = scmp.ne.s32.totalorder %s17_s15, %s792_s21  ;;  %p798_p7 = scmp.lt.s32.totalorder %s792_s21, %s792_s21 }
  0x11   :  { %p799_p8 = por %p798_p7, %p797_p6 }
  0x13   :  { %p800_p9 = pnand %p799_p8, %p793_p5 }
  0x15   :  { %803 = shalt.err (!%p800_p9)
}
  0x16   :  { %22 = dma.hbm_to_vmem [thread:$0]  %s909_s0, 256, %s17_s15, [#allocation3], %s852_s17, %s852_s17, %s853_s18  }
  0x17   :  { %s854_s24 = smov [#allocation7]  }
  0x18   :  { %s40_s25 = sshll.u32 %s854_s24, 4  ;;  %s41_s25 = int_to_ptr.vmem [resolvable:$true] %s40_s25 }
  0x19   :  { %s812_s26 = scalar_lea.vmem %s41_s25, 64  ;;  %p817_p11 = scmp.lt.s32.totalorder %s41_s25, %s41_s25 }
  0x1a   :  { %p813_p10 = scmp.ne.s32.totalorder %s41_s25, %s812_s26  ;;  %p818_p12 = scmp.lt.s32.totalorder %s812_s26, %s812_s26 }
  0x1c   :  { %p819_p13 = por %p818_p12, %p817_p11 }
  0x1e   :  { %p820_p0 = pnand %p819_p13, %p813_p10 }
  0x20   :  { %823 = shalt.err (!%p820_p0)
}
  0x21   :  { %s855_s1 = smov 16   ;;  %s856_s27 = smov 1  }
  0x22   :  { %46 = dma.hbm_to_vmem [thread:$0]  %s911_s2, 64, %s41_s25, [#allocation6], %s855_s1, %s855_s1, %s856_s27  }
  0x23   :  { %844 = dma.done.wait [#allocation3], 256  }
  0x24   :  { %845 = vsyncadd [#allocation3], 4294967040 }
  0x25   :  { %846 = dma.done.wait [#allocation6], 8256  }
  0x26   :  { %847 = vsyncadd [#allocation6], 4294959040  ;;  %v90_v0 = vld [vmem:[#allocation5 + $0xf8] sm:$0xff]  ;;  %v89_v1 = vld [vmem:[#allocation5 + $0xf0] sm:$0xff]  ;;  %s857_s0 = smov [#allocation8]  }
  0x27   :  { %635 = vmatprep.subr.mxu1 %v90_v0  ;;  %v88_v2 = vld [vmem:[#allocation5 + $0xe8] sm:$0xff]  ;;  %v87_v3 = vld [vmem:[#allocation5 + $0xe0] sm:$0xff]  ;;  %v73_v4 = vld [vmem:[#allocation5 + $0x78] sm:$0xff]  ;;  %s507_s2 = sshll.u32 %s857_s0, 4  ;;  %s508_s2 = int_to_ptr.vmem [resolvable:$true] %s507_s2 }
  0x28   :  { %636 = vmatpush3.msra.mxu1 %v90_v0  ;;  %v893_v5 = vld [vmem:[#allocation2] sm:$0xff]  ;;  %v86_v6 = vld [vmem:[#allocation5 + $0xd8] sm:$0xff]  ;;  %600 = vmatprep.subr.mxu0 %v73_v4  ;;  %v71_v9 = vld [vmem:[#allocation5 + $0x68] sm:$0xff]  ;;  %s824_s30 = scalar_lea.vmem %s508_s2, 256  ;;  %p829_p2 = scmp.lt.s32.totalorder %s508_s2, %s508_s2 }
  0x29   :  { %637 = vmatprep.subr.mxu1 %v89_v1  ;;  %v72_v7 = vld [vmem:[#allocation5 + $0x70] sm:$0xff]  ;;  %601 = vmatpush3.msra.mxu0 %v73_v4  ;;  %v84_v10 = vld [vmem:[#allocation5 + $0xc8] sm:$0xff]  ;;  %v70_v11 = vld [vmem:[#allocation5 + $0x60] sm:$0xff]  ;;  %p825_p1 = scmp.ne.s32.totalorder %s508_s2, %s824_s30  ;;  %p830_p3 = scmp.lt.s32.totalorder %s824_s30, %s824_s30 }
  0x2a   :  { %638 = vmatpush3.msra.mxu1 %v89_v1  ;;  %v85_v8 = vld [vmem:[#allocation5 + $0xd0] sm:$0xff]  ;;  %667 = vmatprep.mubr.f32.mxu1 %v893_v5  ;;  %v83_v12 = vld [vmem:[#allocation5 + $0xc0] sm:$0xff]  ;;  %v69_v13 = vld [vmem:[#allocation5 + $0x58] sm:$0xff] }
  0x2b   :  { %639 = vmatprep.subr.mxu1 %v88_v2  ;;  %602 = vmatprep.subr.mxu0 %v72_v7  ;;  %v82_v14 = vld [vmem:[#allocation5 + $0xb8] sm:$0xff]  ;;  %v68_v15 = vld [vmem:[#allocation5 + $0x50] sm:$0xff]  ;;  %v67_v17 = vld [vmem:[#allocation5 + $0x48] sm:$0xff]  ;;  %p831_p4 = por %p830_p3, %p829_p2 }
  0x2c   :  { %640 = vmatpush3.msra.mxu1 %v88_v2  ;;  %603 = vmatpush3.msra.mxu0 %v72_v7  ;;  %v81_v16 = vld [vmem:[#allocation5 + $0xb0] sm:$0xff]  ;;  %v80_v18 = vld [vmem:[#allocation5 + $0xa8] sm:$0xff]  ;;  %v66_v19 = vld [vmem:[#allocation5 + $0x40] sm:$0xff] }
  0x2d   :  { %641 = vmatprep.subr.mxu1 %v87_v3  ;;  %604 = vmatprep.subr.mxu0 %v71_v9  ;;  %v79_v20 = vld [vmem:[#allocation5 + $0xa0] sm:$0xff]  ;;  %v65_v21 = vld [vmem:[#allocation5 + $0x38] sm:$0xff]  ;;  %v64_v23 = vld [vmem:[#allocation5 + $0x30] sm:$0xff]  ;;  %p832_p5 = pnand %p831_p4, %p825_p1 }
  0x2e   :  { %642 = vmatpush3.msra.mxu1 %v87_v3  ;;  %605 = vmatpush3.msra.mxu0 %v71_v9  ;;  %v78_v22 = vld [vmem:[#allocation5 + $0x98] sm:$0xff]  ;;  %v77_v24 = vld [vmem:[#allocation5 + $0x90] sm:$0xff]  ;;  %v63_v25 = vld [vmem:[#allocation5 + $0x28] sm:$0xff] }
  0x2f   :  { %643 = vmatprep.subr.mxu1 %v86_v6  ;;  %606 = vmatprep.subr.mxu0 %v70_v11  ;;  %v76_v26 = vld [vmem:[#allocation5 + $0x88] sm:$0xff]  ;;  %v62_v27 = vld [vmem:[#allocation5 + $0x20] sm:$0xff]  ;;  %v61_v29 = vld [vmem:[#allocation5 + $0x18] sm:$0xff] }
  0x30   :  { %644 = vmatpush3.msra.mxu1 %v86_v6  ;;  %607 = vmatpush3.msra.mxu0 %v70_v11  ;;  %v75_v28 = vld [vmem:[#allocation5 + $0x80] sm:$0xff]  ;;  %v896_v30 = vld [vmem:[#allocation2 + $0x8] sm:$0xff]  ;;  %v60_v31 = vld [vmem:[#allocation5 + $0x10] sm:$0xff] }
  0x31   :  { %645 = vmatprep.subr.mxu1 %v85_v8  ;;  %608 = vmatprep.subr.mxu0 %v69_v13  ;;  %v59_v32 = vld [vmem:[#allocation5 + $0x8] sm:$0xff]  ;;  %v58_v33 = vld [vmem:[#allocation5] sm:$0xff]  ;;  %v294_v34 = vld [vmem:[#allocation5 + $0x178] sm:$0xff] }
  0x32   :  { %646 = vmatpush3.msra.mxu1 %v85_v8  ;;  %609 = vmatpush3.msra.mxu0 %v69_v13  ;;  %v311_v35 = vld [vmem:[#allocation5 + $0x1f8] sm:$0xff]  ;;  %v293_v36 = vld [vmem:[#allocation5 + $0x170] sm:$0xff]  ;;  %v292_v38 = vld [vmem:[#allocation5 + $0x168] sm:$0xff] }
  0x33   :  { %647 = vmatprep.subr.mxu1 %v84_v10  ;;  %610 = vmatprep.subr.mxu0 %v68_v15  ;;  %v310_v37 = vld [vmem:[#allocation5 + $0x1f0] sm:$0xff]  ;;  %v309_v39 = vld [vmem:[#allocation5 + $0x1e8] sm:$0xff]  ;;  %v291_v40 = vld [vmem:[#allocation5 + $0x160] sm:$0xff] }
  0x34   :  { %648 = vmatpush3.msra.mxu1 %v84_v10  ;;  %611 = vmatpush3.msra.mxu0 %v68_v15  ;;  %v308_v41 = vld [vmem:[#allocation5 + $0x1e0] sm:$0xff]  ;;  %v290_v42 = vld [vmem:[#allocation5 + $0x158] sm:$0xff]  ;;  %v289_v44 = vld [vmem:[#allocation5 + $0x150] sm:$0xff] }
  0x35   :  { %649 = vmatprep.subr.mxu1 %v83_v12  ;;  %612 = vmatprep.subr.mxu0 %v67_v17  ;;  %v307_v43 = vld [vmem:[#allocation5 + $0x1d8] sm:$0xff]  ;;  %v306_v45 = vld [vmem:[#allocation5 + $0x1d0] sm:$0xff]  ;;  %v288_v46 = vld [vmem:[#allocation5 + $0x148] sm:$0xff] }
  0x36   :  { %650 = vmatpush3.msra.mxu1 %v83_v12  ;;  %613 = vmatpush3.msra.mxu0 %v67_v17  ;;  %v305_v47 = vld [vmem:[#allocation5 + $0x1c8] sm:$0xff]  ;;  %v287_v48 = vld [vmem:[#allocation5 + $0x140] sm:$0xff]  ;;  %v286_v50 = vld [vmem:[#allocation5 + $0x138] sm:$0xff] }
  0x37   :  { %651 = vmatprep.subr.mxu1 %v82_v14  ;;  %614 = vmatprep.subr.mxu0 %v66_v19  ;;  %v304_v49 = vld [vmem:[#allocation5 + $0x1c0] sm:$0xff]  ;;  %v303_v51 = vld [vmem:[#allocation5 + $0x1b8] sm:$0xff]  ;;  %v285_v52 = vld [vmem:[#allocation5 + $0x130] sm:$0xff] }
  0x38   :  { %652 = vmatpush3.msra.mxu1 %v82_v14  ;;  %615 = vmatpush3.msra.mxu0 %v66_v19  ;;  %v302_v53 = vld [vmem:[#allocation5 + $0x1b0] sm:$0xff]  ;;  %v284_v54 = vld [vmem:[#allocation5 + $0x128] sm:$0xff]  ;;  %v283_v56 = vld [vmem:[#allocation5 + $0x120] sm:$0xff] }
  0x39   :  { %653 = vmatprep.subr.mxu1 %v81_v16  ;;  %616 = vmatprep.subr.mxu0 %v65_v21  ;;  %v301_v55 = vld [vmem:[#allocation5 + $0x1a8] sm:$0xff]  ;;  %v300_v57 = vld [vmem:[#allocation5 + $0x1a0] sm:$0xff]  ;;  %v282_v58 = vld [vmem:[#allocation5 + $0x118] sm:$0xff] }
  0x3a   :  { %654 = vmatpush3.msra.mxu1 %v81_v16  ;;  %617 = vmatpush3.msra.mxu0 %v65_v21  ;;  %v299_v59 = vld [vmem:[#allocation5 + $0x198] sm:$0xff]  ;;  %v281_v60 = vld [vmem:[#allocation5 + $0x110] sm:$0xff]  ;;  %v280_v62 = vld [vmem:[#allocation5 + $0x108] sm:$0xff] }
  0x3b   :  { %655 = vmatprep.subr.mxu1 %v80_v18  ;;  %618 = vmatprep.subr.mxu0 %v64_v23  ;;  %v298_v61 = vld [vmem:[#allocation5 + $0x190] sm:$0xff]  ;;  %v297_v63 = vld [vmem:[#allocation5 + $0x188] sm:$0xff]  ;;  %v279_v0 = vld [vmem:[#allocation5 + $0x100] sm:$0xff] }
  0x3c   :  { %656 = vmatpush3.msra.mxu1 %v80_v18  ;;  %619 = vmatpush3.msra.mxu0 %v64_v23  ;;  %v296_v1 = vld [vmem:[#allocation5 + $0x180] sm:$0xff] }
  0x3d   :  { %657 = vmatprep.subr.mxu1 %v79_v20  ;;  %620 = vmatprep.subr.mxu0 %v63_v25  ;;  %v521_v2 = vld [vmem:[#allocation7 + $0x1] ss:$0 sm:$0xff]  ;;  %v520_v15 = vld [vmem:[#allocation7] ss:$0 sm:$0xff] }
  0x3e   :  { %658 = vmatpush3.msra.mxu1 %v79_v20  ;;  %621 = vmatpush3.msra.mxu0 %v63_v25 }
  0x3f   :  { %659 = vmatprep.subr.mxu1 %v78_v22  ;;  %622 = vmatprep.subr.mxu0 %v62_v27 }
  0x40   :  { %660 = vmatpush3.msra.mxu1 %v78_v22  ;;  %623 = vmatpush3.msra.mxu0 %v62_v27 }
  0x41   :  { %661 = vmatprep.subr.mxu1 %v77_v24  ;;  %624 = vmatprep.subr.mxu0 %v61_v29 }
  0x42   :  { %662 = vmatpush3.msra.mxu1 %v77_v24  ;;  %625 = vmatpush3.msra.mxu0 %v61_v29 }
  0x43   :  { %663 = vmatprep.subr.mxu1 %v76_v26  ;;  %626 = vmatprep.subr.mxu0 %v60_v31 }
  0x44   :  { %664 = vmatpush3.msra.mxu1 %v76_v26  ;;  %627 = vmatpush3.msra.mxu0 %v60_v31 }
  0x45   :  { %665 = vmatprep.subr.mxu1 %v75_v28  ;;  %632 = vmatprep.mubr.f32.mxu0 %v893_v5 }
  0x46   :  { %666 = vmatpush3.msra.mxu1 %v75_v28  ;;  %628 = vmatprep.subr.mxu0 %v59_v32 }
  0x47   :  { %668 = vmatmul.mubr.f32.vlgmr.msra.gmra.mxu1 %v896_v30  ;;  %629 = vmatpush3.msra.mxu0 %v59_v32  ;;  %v525_v32 = vld [vmem:[#allocation7 + $0x3] ss:$0 sm:$0xff] }
  0x48   :  { %630 = vmatprep.subr.mxu0 %v58_v33  ;;  %705 = vmatprep.subr.mxu1 %v311_v35 }
  0x49   :  { %631 = vmatpush3.msra.mxu0 %v58_v33  ;;  %706 = vmatpush3.msra.mxu1 %v311_v35 }
  0x4a   :  { %633 = vmatmul.mubr.f32.vlgmr.msra.gmra.mxu0 %v896_v30  ;;  %670 = vmatprep.subr.mxu0 %v294_v34 }
  0x4b   :  { %671 = vmatpush3.msra.mxu0 %v294_v34  ;;  %707 = vmatprep.subr.mxu1 %v310_v37 }
  0x4c   :  { %672 = vmatprep.subr.mxu0 %v293_v36  ;;  %708 = vmatpush3.msra.mxu1 %v310_v37 }
  0x4d   :  { %673 = vmatpush3.msra.mxu0 %v293_v36  ;;  %709 = vmatprep.subr.mxu1 %v309_v39 }
  0x4e   :  { %674 = vmatprep.subr.mxu0 %v292_v38  ;;  %710 = vmatpush3.msra.mxu1 %v309_v39 }
  0x4f   :  { %675 = vmatpush3.msra.mxu0 %v292_v38  ;;  %711 = vmatprep.subr.mxu1 %v308_v41 }
  0x50   :  { %676 = vmatprep.subr.mxu0 %v291_v40  ;;  %712 = vmatpush3.msra.mxu1 %v308_v41 }
  0x51   :  { %677 = vmatpush3.msra.mxu0 %v291_v40  ;;  %713 = vmatprep.subr.mxu1 %v307_v43 }
  0x52   :  { %678 = vmatprep.subr.mxu0 %v290_v42  ;;  %714 = vmatpush3.msra.mxu1 %v307_v43 }
  0x53   :  { %679 = vmatpush3.msra.mxu0 %v290_v42  ;;  %715 = vmatprep.subr.mxu1 %v306_v45  ;;  %v524_v42 = vld [vmem:[#allocation7 + $0x2] ss:$0 sm:$0xff] }
  0x54   :  { %680 = vmatprep.subr.mxu0 %v289_v44  ;;  %716 = vmatpush3.msra.mxu1 %v306_v45 }
  0x55   :  { %681 = vmatpush3.msra.mxu0 %v289_v44  ;;  %717 = vmatprep.subr.mxu1 %v305_v47 }
  0x56   :  { %682 = vmatprep.subr.mxu0 %v288_v46  ;;  %718 = vmatpush3.msra.mxu1 %v305_v47 }
  0x57   :  { %683 = vmatpush3.msra.mxu0 %v288_v46  ;;  %719 = vmatprep.subr.mxu1 %v304_v49 }
  0x58   :  { %684 = vmatprep.subr.mxu0 %v287_v48  ;;  %720 = vmatpush3.msra.mxu1 %v304_v49 }
  0x59   :  { %685 = vmatpush3.msra.mxu0 %v287_v48  ;;  %721 = vmatprep.subr.mxu1 %v303_v51 }
  0x5a   :  { %686 = vmatprep.subr.mxu0 %v286_v50  ;;  %722 = vmatpush3.msra.mxu1 %v303_v51 }
  0x5b   :  { %687 = vmatpush3.msra.mxu0 %v286_v50  ;;  %723 = vmatprep.subr.mxu1 %v302_v53 }
  0x5c   :  { %688 = vmatprep.subr.mxu0 %v285_v52  ;;  %724 = vmatpush3.msra.mxu1 %v302_v53 }
  0x5d   :  { %689 = vmatpush3.msra.mxu0 %v285_v52  ;;  %725 = vmatprep.subr.mxu1 %v301_v55 }
  0x5e   :  { %690 = vmatprep.subr.mxu0 %v284_v54  ;;  %726 = vmatpush3.msra.mxu1 %v301_v55 }
  0x5f   :  { %691 = vmatpush3.msra.mxu0 %v284_v54  ;;  %727 = vmatprep.subr.mxu1 %v300_v57 }
  0x60   :  { %692 = vmatprep.subr.mxu0 %v283_v56  ;;  %728 = vmatpush3.msra.mxu1 %v300_v57 }
  0x61   :  { %693 = vmatpush3.msra.mxu0 %v283_v56  ;;  %729 = vmatprep.subr.mxu1 %v299_v59 }
  0x62   :  { %694 = vmatprep.subr.mxu0 %v282_v58  ;;  %730 = vmatpush3.msra.mxu1 %v299_v59 }
  0x63   :  { %695 = vmatpush3.msra.mxu0 %v282_v58  ;;  %731 = vmatprep.subr.mxu1 %v298_v61 }
  0x64   :  { %696 = vmatprep.subr.mxu0 %v281_v60  ;;  %732 = vmatpush3.msra.mxu1 %v298_v61 }
  0x65   :  { %697 = vmatpush3.msra.mxu0 %v281_v60  ;;  %733 = vmatprep.subr.mxu1 %v297_v63 }
  0x66   :  { %698 = vmatprep.subr.mxu0 %v280_v62  ;;  %734 = vmatpush3.msra.mxu1 %v297_v63 }
  0x67   :  { %699 = vmatpush3.msra.mxu0 %v280_v62  ;;  %735 = vmatprep.subr.mxu1 %v296_v1 }
  0x68   :  { %700 = vmatprep.subr.mxu0 %v279_v0  ;;  %736 = vmatpush3.msra.mxu1 %v296_v1 }
  0x69   :  { %701 = vmatpush3.msra.mxu0 %v279_v0 }
 0x107   :  { %v669_v3 = vpop.f32.mrf.mxu1 }
 0x108   :  { %v253_v4 = vadd.f32 %v669_v3, %v521_v2 }
 0x109   :  { %v247_v6 = vpop.f32.mrf.mxu1 }
 0x10a   :  { %v523_v7 = vmul.f32 -1.442695, %v253_v4  ;;  %v248_v8 = vadd.f32 %v521_v2, %v247_v6  ;;  %v634_v14 = vpop.f32.mrf.mxu0 }
 0x10b   :  { %v170_v16 = vadd.f32 %v634_v14, %v520_v15 }
 0x10c   :  { %748 = vpow2.f32 %v523_v7  ;;  %v522_v9 = vmul.f32 -1.442695, %v248_v8  ;;  %v164_v17 = vpop.f32.mrf.mxu0 }
 0x10d   :  { %v165_v18 = vadd.f32 %v520_v15, %v164_v17  ;;  %v257_v20 = vmax.f32 %v170_v16, 0.0 }
 0x10e   :  { %750 = vpow2.f32 %v522_v9 }
 0x10f   :  { %v256_v23 = vmax.f32 %v165_v18, 0.0 }
 0x119   :  { %v749_v10 = vpop.eup %748 }
 0x11a   :  { %v265_v11 = vadd.f32 1.0, %v749_v10 }
 0x11b   :  { %v751_v12 = vpop.eup %750 }
 0x11c   :  { %752 = vrcp.f32 %v265_v11  ;;  %v264_v13 = vadd.f32 1.0, %v751_v12 }
 0x11e   :  { %754 = vrcp.f32 %v264_v13 }
 0x129   :  { %v753_v19 = vpop.eup %752 }
 0x12a   :  { %v273_v21 = vsub.f32 1.0, %v753_v19  ;;  %v271_v28 = vmul.f32 %v753_v19, %v896_v30 }
 0x12b   :  { %v755_v22 = vpop.eup %754 }
 0x12c   :  { %v272_v24 = vsub.f32 1.0, %v755_v22  ;;  %v275_v25 = vmul.f32 %v273_v21, %v257_v20  ;;  %v270_v27 = vmul.f32 %v755_v22, %v893_v5 }
 0x12e   :  { %v274_v26 = vmul.f32 %v272_v24, %v256_v23  ;;  %v277_v31 = vadd.f32 %v275_v25, %v271_v28 }
 0x130   :  { %v276_v29 = vadd.f32 %v274_v26, %v270_v27 }
 0x132   :  { %702 = vmatprep.mubr.f32.mxu0 %v276_v29  ;;  %737 = vmatprep.mubr.f32.mxu1 %v276_v29 }
 0x133   :  { %703 = vmatmul.mubr.f32.vlgmr.msra.gmra.mxu0 %v277_v31  ;;  %738 = vmatmul.mubr.f32.vlgmr.msra.gmra.mxu1 %v277_v31 }
 0x1f3   :  { %v739_v33 = vpop.f32.mrf.mxu1  ;;  %v704_v41 = vpop.f32.mrf.mxu0 }
 0x1f4   :  { %v475_v34 = vadd.f32 %v739_v33, %v525_v32  ;;  %v392_v44 = vadd.f32 %v704_v41, %v524_v42 }
 0x1f5   :  { %v469_v35 = vpop.f32.mrf.mxu1  ;;  %v386_v43 = vpop.f32.mrf.mxu0 }
 0x1f6   :  { %v527_v36 = vmul.f32 -1.442695, %v475_v34  ;;  %v470_v37 = vadd.f32 %v525_v32, %v469_v35  ;;  %v387_v45 = vadd.f32 %v524_v42, %v386_v43  ;;  %v479_v47 = vmax.f32 %v392_v44, 0.0 }
 0x1f8   :  { %756 = vpow2.f32 %v527_v36  ;;  %v526_v38 = vmul.f32 -1.442695, %v470_v37  ;;  %v478_v50 = vmax.f32 %v387_v45, 0.0 }
 0x1fa   :  { %758 = vpow2.f32 %v526_v38 }
 0x205   :  { %v757_v39 = vpop.eup %756 }
 0x206   :  { %v487_v40 = vadd.f32 1.0, %v757_v39 }
 0x207   :  { %v759_v5 = vpop.eup %758 }
 0x208   :  { %760 = vrcp.f32 %v487_v40  ;;  %v486_v30 = vadd.f32 1.0, %v759_v5 }
 0x20a   :  { %762 = vrcp.f32 %v486_v30 }
 0x215   :  { %v761_v46 = vpop.eup %760 }
 0x216   :  { %v495_v48 = vsub.f32 1.0, %v761_v46  ;;  %v493_v51 = vmul.f32 %v761_v46, %v277_v31 }
 0x217   :  { %v763_v49 = vpop.eup %762 }
 0x218   :  { %v494_v52 = vsub.f32 1.0, %v763_v49  ;;  %v497_v53 = vmul.f32 %v495_v48, %v479_v47  ;;  %v492_v54 = vmul.f32 %v763_v49, %v276_v29 }
 0x21a   :  { %v496_v55 = vmul.f32 %v494_v52, %v478_v50  ;;  %v499_v56 = vadd.f32 %v497_v53, %v493_v51 }
 0x21c   :  { %v498_v57 = vadd.f32 %v496_v55, %v492_v54  ;;  %501 = vst [vmem:[#allocation8 + $0x8] sm:$0xff] %v499_v56 }
 0x21e   :  { %500 = vst [vmem:[#allocation8] sm:$0xff] %v498_v57 }
 0x21f   :  { %835 = shalt.err (!%p832_p5)
}
 0x220   :  { %513 = dma.vmem_to_hbm [thread:$0]  %s508_s2, 256, %s912_s3, [#allocation4], %s852_s17, %s852_s17, %s853_s18  }
 0x221   :  { %848 = dma.done.wait [#allocation4], 256  }
 0x222   :  { %849 = vsyncadd [#allocation4], 4294967040 }
 0x223   :  { %517 = vsyncpa [#allocation3], 1 }
 0x224   :  { %518 = vsyncpa [#allocation6], 1 }
 0x225   :  { %519 = vsyncpa [#allocation4], 1 }

</bundles_post_ra>
